<compile_context>
chip_gen: v6e
topology: v6e:2x2x1
jax: 0.10.0
libtpu: 0.0.40
codegen_flags: <defaults>
</compile_context>

<pallas_src>
import functools

import jax
import jax.numpy as jnp
from jax.experimental import pallas as pl
from jax.experimental.pallas import tpu as pltpu


def _loss_non_leaf_kernel(lab_ref, x_ref, t_ref, o_ref, *,
                          temperature, alpha, n_total, has_ragged):
    i = pl.program_id(0)

    x = x_ref[...].astype(jnp.float32)      # student logits  (TILE_N, C)
    t = t_ref[...].astype(jnp.float32)      # teacher logits  (TILE_N, C), treated as detached
    lab = lab_ref[...]                      # labels          (TILE_N, 1) int32
    tile_n, c = x.shape

    T = float(temperature)
    inv_t = 1.0 / T
    kl_scale = float(alpha) * T * T
    eps = 1e-7

    col = jax.lax.broadcasted_iota(jnp.int32, (tile_n, c), 1)

    # ---- CE path (no full-width log_softmax materialized) ------------------------
    m_x = jnp.max(x, axis=1, keepdims=True)            # reused for the x/T path below
    z_ce = x - m_x
    lse_ce = jnp.log(jnp.sum(jnp.exp(z_ce), axis=1, keepdims=True))
    z_at_label = jnp.sum(jnp.where(col == lab, z_ce, 0.0), axis=1, keepdims=True)
    ce_rows = lse_ce - z_at_label                        # (TILE_N, 1)

    # ---- student log-probs at temperature T (KL term) -----------------------------
    if T == 1.0:
        log_student = z_ce - lse_ce                      # reuse the CE pass entirely
    else:
        z_s = z_ce * inv_t                               # max(x/T) == max(x)/T for T > 0
        lse_s = jnp.log(jnp.sum(jnp.exp(z_s), axis=1, keepdims=True))
        log_student = z_s - lse_s

    # ---- teacher: softmax(t/T) + 1e-7; log taken analytically (no full-width log) --
    ts = t if T == 1.0 else t * inv_t
    m_t = jnp.max(ts, axis=1, keepdims=True)
    z_t = ts - m_t
    e_t = jnp.exp(z_t)
    s_t = jnp.sum(e_t, axis=1, keepdims=True)
    inv_s = 1.0 / s_t                                    # exact recip on (TILE_N, 1) only
    p_t = e_t * inv_s + eps                              # matches softmax(...) + 1e-7
    log_p_t = z_t - jnp.log(s_t)                         # == log(softmax) (eps only in factor)
    kl_rows = jnp.sum(p_t * (log_p_t - log_student), axis=1, keepdims=True)

    row_contrib = ce_rows + kl_scale * kl_rows           # (TILE_N, 1)

    if has_ragged:
        # Last block over-runs N: OOB rows carry garbage (possibly NaN/Inf) -> select, not mul.
        row = i * tile_n + jax.lax.broadcasted_iota(jnp.int32, (tile_n, 1), 0)
        row_contrib = jnp.where(row < n_total, row_contrib, 0.0)

    o_ref[0, 0] = jnp.sum(row_contrib)                   # per-tile partial; 1/N applied in JAX


def _pick_tile_n(n, c, itemsize):
    # Double-buffered input streams: student + teacher logits (2 streams x 2 buffers x C x
    # itemsize per row) plus the lane-padded (TILE_N, 1) int32 label blocks
    # (2 buffers x 128 lanes x 4 B per row). Budget ~20 MiB under the 32 MiB scoped limit.
    budget = 20 * 1024 * 1024
    per_row = 2 * 2 * c * itemsize + 2 * 128 * 4
    align = 16 if itemsize == 2 else 8                  # bf16 packs (16, 128) per vreg
    tile = min(2048, budget // per_row)
    tile = max(align, (tile // align) * align)
    n_ceil = ((n + align - 1) // align) * align
    return max(align, min(tile, n_ceil))


def loss_non_leaf(output_batch, teacher_outputs, label, *,
                  temperature=1.0, alpha=10.0, tile_n=None):
    """output_batch: (N, C), teacher_outputs: (N, C), label: (N,) int -> scalar f32 loss."""
    n, c = output_batch.shape
    itemsize = jnp.dtype(output_batch.dtype).itemsize
    align = 16 if itemsize == 2 else 8

    if tile_n is None:
        tile_n = _pick_tile_n(n, c, itemsize)
    tile_n = max(align, (int(tile_n) // align) * align)

    grid = pl.cdiv(n, tile_n)
    has_ragged = (n % tile_n) != 0

    lab = label.astype(jnp.int32).reshape(n, 1)          # tiny; no (N, C) padding anywhere

    kernel = functools.partial(
        _loss_non_leaf_kernel,
        temperature=float(temperature), alpha=float(alpha),
        n_total=n, has_ragged=has_ragged,
    )

    n_exp_passes = 2 if float(temperature) == 1.0 else 3   # full-width transcendental passes
    cost = pl.CostEstimate(
        flops=int(14 * n * c),
        transcendentals=int(n_exp_passes * n * c),
        bytes_accessed=int(2 * n * c * itemsize + n * 4 + grid * 4),
    )

    partials = pl.pallas_call(
        kernel,
        out_shape=jax.ShapeDtypeStruct((grid, 1), jnp.float32),
        grid_spec=pltpu.PrefetchScalarGridSpec(
            num_scalar_prefetch=0,
            grid=(grid,),
            in_specs=[
                pl.BlockSpec((tile_n, 1), lambda i: (i, 0)),   # labels
                pl.BlockSpec((tile_n, c), lambda i: (i, 0)),   # student logits
                pl.BlockSpec((tile_n, c), lambda i: (i, 0)),   # teacher logits
            ],
            out_specs=pl.BlockSpec((1, 1), lambda i: (i, 0), memory_space=pltpu.SMEM),
        ),
        compiler_params=pltpu.CompilerParams(
            dimension_semantics=("parallel",),                 # no carried state -> megacore OK
            vmem_limit_bytes=32 * 1024 * 1024,
        ),
        cost_estimate=cost,
    )(lab, output_batch, teacher_outputs)

    return jnp.sum(partials) * (1.0 / float(n))


def _loss_non_leaf_ref(output_batch, teacher_outputs, label, *,
                       temperature=1.0, alpha=10.0, eps_inside_log=True):
    """Pure-JAX reference. eps_inside_log=True matches PyTorch (log(softmax + 1e-7));
    False mirrors the kernel's analytic log-softmax (eps only in the multiplying factor)."""
    x = output_batch.astype(jnp.float32)
    t = teacher_outputs.astype(jnp.float32)
    n, _ = x.shape
    T = float(temperature)

    logp = jax.nn.log_softmax(x, axis=1)
    loss_ce = -jnp.mean(jnp.take_along_axis(logp, label[:, None].astype(jnp.int32), axis=1))

    log_student = jax.nn.log_softmax(x / T, axis=1)
    p_teacher = jax.nn.softmax(t / T, axis=1)
    if eps_inside_log:
        log_p = jnp.log(p_teacher + 1e-7)
    else:
        log_p = jax.nn.log_softmax(t / T, axis=1)
    kl = jnp.sum((p_teacher + 1e-7) * (log_p - log_student)) / n
    return loss_ce + float(alpha) * T * T * kl


if __name__ == "__main__":
    key = jax.random.PRNGKey(0)
    k1, k2, k3 = jax.random.split(key, 3)

    N, C = 48, 128
    x = jax.random.normal(k1, (N, C), dtype=jnp.float32)
    t = jax.random.normal(k2, (N, C), dtype=jnp.float32)
    lab = jax.random.randint(k3, (N,), 0, C, dtype=jnp.int32)

    def check(loss, xx, tt, T, a):
        # Tight check vs. a reference mirroring the kernel's eps placement.
        ref_k = _loss_non_leaf_ref(xx, tt, lab, temperature=T, alpha=a, eps_inside_log=False)
        assert jnp.allclose(loss, ref_k, rtol=1e-4, atol=1e-5), (loss, ref_k)
        # Loose check vs. the exact PyTorch formula; deviation bounded by ~ a*T^2*C*1e-7.
        ref_e = _loss_non_leaf_ref(xx, tt, lab, temperature=T, alpha=a, eps_inside_log=True)
        bound = 4.0 * a * T * T * C * 1e-7
        assert jnp.allclose(loss, ref_e, rtol=1e-4, atol=1e-5 + bound), (loss, ref_e)

    # 1) Module defaults (temperature=1, alpha=10): single 48-row tile, T==1 fast path.
    loss1 = jax.block_until_ready(
        loss_non_leaf(x, t, lab, temperature=1.0, alpha=10.0))
    check(loss1, x, t, 1.0, 10.0)

    # 2) T=3 with a forced small tile: multi-tile "parallel" grid, T!=1 path, and a ragged
    #    last block (rows 48..63 are out-of-bounds garbage, masked in-kernel; no wrapper pad).
    loss3 = jax.block_until_ready(
        loss_non_leaf(x, t, lab, temperature=3.0, alpha=10.0, tile_n=32))
    check(loss3, x, t, 3.0, 10.0)

    # 3) bf16 streaming path (halves HBM traffic on v5e/v6e, 16-row tile alignment);
    #    reference is computed on the same bf16-quantized inputs upcast to f32.
    xb, tb = x.astype(jnp.bfloat16), t.astype(jnp.bfloat16)
    lossb = jax.block_until_ready(
        loss_non_leaf(xb, tb, lab, temperature=3.0, alpha=10.0))
    check(lossb, xb, tb, 3.0, 10.0)

    print("KERNEL_OK")
</pallas_src>

<mosaic_0001>
module attributes {stable_mosaic.version = 11 : i64} {
  func.func @_loss_non_leaf_kernel(%arg0: i32, %arg1: memref<48x1xi32, #tpu.memory_space<vmem>>, %arg2: memref<48x128xf32, #tpu.memory_space<vmem>>, %arg3: memref<48x128xf32, #tpu.memory_space<vmem>>, %arg4: memref<1x1xf32, #tpu.memory_space<smem>>) attributes {dimension_semantics = [#tpu.dimension_semantics<parallel>], iteration_bounds = array<i64: 1>, scalar_prefetch = 0 : i64, scratch_operands = 0 : i64, tpu.core_type = #tpu.core_type<tc>, window_params = [{transform_indices = @transform_0, window_bounds = array<i64: 48, 1>}, {transform_indices = @transform_1, window_bounds = array<i64: 48, 128>}, {transform_indices = @transform_2, window_bounds = array<i64: 48, 128>}, {transform_indices = @transform_3, window_bounds = array<i64: 1, 1>}]} {
    %c0 = arith.constant 0 : index
    %c0_0 = arith.constant 0 : index
    %0 = vector.load %arg2[%c0, %c0_0] : memref<48x128xf32, #tpu.memory_space<vmem>>, vector<48x128xf32>
    %c0_1 = arith.constant 0 : index
    %c0_2 = arith.constant 0 : index
    %1 = vector.load %arg3[%c0_1, %c0_2] : memref<48x128xf32, #tpu.memory_space<vmem>>, vector<48x128xf32>
    %c0_3 = arith.constant 0 : index
    %c0_4 = arith.constant 0 : index
    %2 = vector.load %arg1[%c0_3, %c0_4] : memref<48x1xi32, #tpu.memory_space<vmem>>, vector<48x1xi32>
    %3 = tpu.iota {dimensions = array<i32: 1>} : vector<48x128xi32>
    %cst = arith.constant dense<0xFF800000> : vector<48xf32>
    %4 = vector.multi_reduction <maximumf>, %0, %cst [1] : vector<48x128xf32> to vector<48xf32>
    %5 = vector.shape_cast %4 : vector<48xf32> to vector<48x1xf32>
    %6 = vector.broadcast %5 : vector<48x1xf32> to vector<48x128xf32>
    %7 = arith.subf %0, %6 : vector<48x128xf32>
    %8 = math.exp %7 : vector<48x128xf32>
    %cst_5 = arith.constant dense<0.000000e+00> : vector<48xf32>
    %9 = vector.multi_reduction <add>, %8, %cst_5 [1] : vector<48x128xf32> to vector<48xf32>
    %10 = vector.shape_cast %9 : vector<48xf32> to vector<48x1xf32>
    %11 = math.log %10 : vector<48x1xf32>
    %12 = vector.broadcast %2 : vector<48x1xi32> to vector<48x128xi32>
    %13 = arith.cmpi eq, %3, %12 : vector<48x128xi32>
    %cst_6 = arith.constant 0.000000e+00 : f32
    %14 = vector.broadcast %cst_6 : f32 to vector<48x128xf32>
    %15 = arith.select %13, %7, %14 : vector<48x128xi1>, vector<48x128xf32>
    %cst_7 = arith.constant dense<0.000000e+00> : vector<48xf32>
    %16 = vector.multi_reduction <add>, %15, %cst_7 [1] : vector<48x128xf32> to vector<48xf32>
    %17 = vector.shape_cast %16 : vector<48xf32> to vector<48x1xf32>
    %18 = arith.subf %11, %17 : vector<48x1xf32>
    %19 = vector.broadcast %11 : vector<48x1xf32> to vector<48x128xf32>
    %20 = arith.subf %7, %19 : vector<48x128xf32>
    %cst_8 = arith.constant dense<0xFF800000> : vector<48xf32>
    %21 = vector.multi_reduction <maximumf>, %1, %cst_8 [1] : vector<48x128xf32> to vector<48xf32>
    %22 = vector.shape_cast %21 : vector<48xf32> to vector<48x1xf32>
    %23 = vector.broadcast %22 : vector<48x1xf32> to vector<48x128xf32>
    %24 = arith.subf %1, %23 : vector<48x128xf32>
    %25 = math.exp %24 : vector<48x128xf32>
    %cst_9 = arith.constant dense<0.000000e+00> : vector<48xf32>
    %26 = vector.multi_reduction <add>, %25, %cst_9 [1] : vector<48x128xf32> to vector<48xf32>
    %27 = vector.shape_cast %26 : vector<48xf32> to vector<48x1xf32>
    %cst_10 = arith.constant 1.000000e+00 : f32
    %28 = vector.broadcast %cst_10 : f32 to vector<48x1xf32>
    %29 = arith.divf %28, %27 : vector<48x1xf32>
    %30 = vector.broadcast %29 : vector<48x1xf32> to vector<48x128xf32>
    %31 = arith.mulf %25, %30 : vector<48x128xf32>
    %cst_11 = arith.constant 1.000000e-07 : f32
    %32 = vector.broadcast %cst_11 : f32 to vector<48x128xf32>
    %33 = arith.addf %31, %32 : vector<48x128xf32>
    %34 = math.log %27 : vector<48x1xf32>
    %35 = vector.broadcast %34 : vector<48x1xf32> to vector<48x128xf32>
    %36 = arith.subf %24, %35 : vector<48x128xf32>
    %37 = arith.subf %36, %20 : vector<48x128xf32>
    %38 = arith.mulf %33, %37 : vector<48x128xf32>
    %cst_12 = arith.constant dense<0.000000e+00> : vector<48xf32>
    %39 = vector.multi_reduction <add>, %38, %cst_12 [1] : vector<48x128xf32> to vector<48xf32>
    %40 = vector.shape_cast %39 : vector<48xf32> to vector<48x1xf32>
    %cst_13 = arith.constant 1.000000e+01 : f32
    %41 = vector.broadcast %cst_13 : f32 to vector<48x1xf32>
    %42 = arith.mulf %41, %40 : vector<48x1xf32>
    %43 = arith.addf %18, %42 : vector<48x1xf32>
    %44 = vector.shape_cast %43 : vector<48x1xf32> to vector<1x48x1xf32>
    %cst_14 = arith.constant dense<0.000000e+00> : vector<1xf32>
    %45 = vector.multi_reduction <add>, %44, %cst_14 [1, 2] : vector<1x48x1xf32> to vector<1xf32>
    %46 = vector.shape_cast %45 : vector<1xf32> to vector<1x1x1xf32>
    %47 = vector.extract %46[0, 0, 0] : f32 from vector<1x1x1xf32>
    %c0_15 = arith.constant 0 : index
    %c0_16 = arith.constant 0 : index
    %48 = memref.load %arg4[%c0_15, %c0_16] : memref<1x1xf32, #tpu.memory_space<smem>>
    memref.store %47, %arg4[%c0_15, %c0_16] : memref<1x1xf32, #tpu.memory_space<smem>>
    return
  }
  func.func @transform_0(%arg0: i32) -> (i32, i32) {
    %c0_i32 = arith.constant 0 : i32
    %c0_i32_0 = arith.constant 0 : i32
    return %arg0, %c0_i32 : i32, i32
  }
  func.func @transform_1(%arg0: i32) -> (i32, i32) {
    %c0_i32 = arith.constant 0 : i32
    %c0_i32_0 = arith.constant 0 : i32
    return %arg0, %c0_i32 : i32, i32
  }
  func.func @transform_2(%arg0: i32) -> (i32, i32) {
    %c0_i32 = arith.constant 0 : i32
    %c0_i32_0 = arith.constant 0 : i32
    return %arg0, %c0_i32 : i32, i32
  }
  func.func @transform_3(%arg0: i32) -> (i32, i32) {
    %c0_i32 = arith.constant 0 : i32
    %c0_i32_0 = arith.constant 0 : i32
    return %arg0, %c0_i32 : i32, i32
  }
}

</mosaic_0001>

<bundles_post_ra>
// kernel: tpu_custom_call.1
= control target key start
LH: loop header
LB: loop body
LE: loop exit
PB: predicated region body
PF: predicated region fallthrough
CT: control target
= control target key end

     0   :  { %8 = vsyncpa [#allocation3], 0  ;;  %s601_s0 = inlined_call_operand.vmem [shape: s32[48,1], index: 0, kind: input, shape index: {}]   ;;  %s602_s1 = inlined_call_operand.vmem [shape: f32[48,128], index: 1, kind: input, shape index: {}]   ;;  %s603_s2 = inlined_call_operand.hbm [shape: f32[48,128], index: 2, kind: input, shape index: {}]   ;;  %s604_s3 = inlined_call_operand.hbm [shape: f32[1,1], index: 3, kind: output, shape index: {}]  }
   0x1   :  { %9 = vsyncpa [#allocation4], 0  ;;  %s415_s12 = smov [#allocation2]  }
   0x2   :  { %s19_s13 = sshll.u32 %s415_s12, 4  ;;  %s20_s13 = int_to_ptr.vmem [resolvable:$true] %s19_s13 }
   0x3   :  { %s391_s14 = scalar_lea.vmem %s20_s13, 768  ;;  %p396_p1 = scmp.lt.s32.totalorder %s20_s13, %s20_s13 }
   0x4   :  { %p392_p0 = scmp.ne.s32.totalorder %s20_s13, %s391_s14  ;;  %p397_p2 = scmp.lt.s32.totalorder %s391_s14, %s391_s14 }
   0x6   :  { %p398_p3 = por %p397_p2, %p396_p1 }
   0x8   :  { %p399_p4 = pnand %p398_p3, %p392_p0 }
   0xa   :  { %402 = shalt.err (!%p399_p4)
}
   0xb   :  { %s416_s15 = smov 128   ;;  %s417_s16 = smov 8  }
   0xc   :  { %25 = dma.hbm_to_vmem [thread:$0]  %s603_s2, 768, %s20_s13, [#allocation3], %s416_s15, %s416_s15, %s417_s16  }
   0xd   :  { %411 = dma.done.wait [#allocation3], 768  }
   0xe   :  { %412 = vsyncadd [#allocation3], 4294966528  ;;  %v29_v0 = vld [vmem:[%s602_s1] sm:$0xff]  ;;  %v30_v2 = vld [vmem:[%s602_s1 + $0x8] sm:$0xff]  ;;  %v418_v12 = vmov 0   ;;  %vm277_vm6 = vcmask 7168  }
   0xf   :  { %v35_v1 = vld [vmem:[#allocation2] sm:$0xff]  ;;  %49 = vmax.xlane.f32.xlu0 %v29_v0  ;;  %v36_v3 = vld [vmem:[#allocation2 + $0x8] sm:$0xff]  ;;  %v31_v4 = vld [vmem:[%s602_s1 + $0x10] sm:$0xff]  ;;  %322 = vset.pattern.permute.xlu1 %v418_v12  ;;  %s419_s14 = smov [#allocation5]  }
  0x10   :  { %157 = vmax.xlane.f32.xlu1 %v35_v1  ;;  %v37_v5 = vld [vmem:[#allocation2 + $0x10] sm:$0xff]  ;;  %v32_v6 = vld [vmem:[%s602_s1 + $0x18] sm:$0xff]  ;;  %v33_v8 = vld [vmem:[%s602_s1 + $0x20] sm:$0xff]  ;;  %321 = vset.pattern.permute.xlu0 %v418_v12 }
  0x11   :  { %v38_v7 = vld [vmem:[#allocation2 + $0x18] sm:$0xff]  ;;  %v39_v9 = vld [vmem:[#allocation2 + $0x20] sm:$0xff]  ;;  %v34_v10 = vld [vmem:[%s602_s1 + $0x28] sm:$0xff] }
  0x12   :  { %v461_v11 = vld [vmem:[#allocation2 + $0x28] sm:$0xff]  ;;  %v43_v58 = vld [vmem:[%s601_s0 + $0x10] sm:$0xff]  ;;  %v41_v59 = vld [vmem:[%s601_s0] sm:$0xff] }
  0x13   :  { %51 = vmax.xlane.f32.xlu0 %v30_v2  ;;  %v42_v57 = vld [vmem:[%s601_s0 + $0x8] sm:$0xff]  ;;  %v44_v60 = vld [vmem:[%s601_s0 + $0x18] sm:$0xff]  ;;  %v45_v61 = vld [vmem:[%s601_s0 + $0x20] sm:$0xff] }
  0x14   :  { %159 = vmax.xlane.f32.xlu1 %v36_v3 }
  0x17   :  { %53 = vmax.xlane.f32.xlu0 %v31_v4 }
  0x18   :  { %161 = vmax.xlane.f32.xlu1 %v37_v5 }
  0x1b   :  { %55 = vmax.xlane.f32.xlu0 %v32_v6 }
  0x1c   :  { %163 = vmax.xlane.f32.xlu1 %v38_v7 }
  0x1f   :  { %57 = vmax.xlane.f32.xlu0 %v33_v8 }
  0x20   :  { %165 = vmax.xlane.f32.xlu1 %v39_v9 }
  0x23   :  { %59 = vmax.xlane.f32.xlu0 %v34_v10 }
  0x24   :  { %167 = vmax.xlane.f32.xlu1 %v461_v11 }
  0x98   :  { %v50_v13 = vpop.xlane.xlu0 %49 }
  0x99   :  { %v158_v14 = vpop.xlane.xlu1 %157  ;;  %v464_v15 = vsub.f32 %v29_v0, %v50_v13 }
  0x9a   :  { %v466_v16 = vsub.f32 %v35_v1, %v158_v14 }
  0x9b   :  { %v67_v17 = vmul.f32 1.442695, %v464_v15 }
  0x9c   :  { %v175_v18 = vmul.f32 1.442695, %v466_v16  ;;  %v52_v19 = vpop.xlane.xlu0 %51 }
  0x9d   :  { %v160_v20 = vpop.xlane.xlu1 %159  ;;  %323 = vpow2.f32 %v67_v17  ;;  %v470_v21 = vsub.f32 %v30_v2, %v52_v19  ;;  %v46_v2 = vld [vmem:[%s601_s0 + $0x28] sm:$0xff] }
  0x9e   :  { %v472_v22 = vsub.f32 %v36_v3, %v160_v20  ;;  %325 = vpow2.f32 %v175_v18 }
  0x9f   :  { %v69_v23 = vmul.f32 1.442695, %v470_v21 }
  0xa0   :  { %v177_v24 = vmul.f32 1.442695, %v472_v22  ;;  %v54_v25 = vpop.xlane.xlu0 %53 }
  0xa1   :  { %v162_v26 = vpop.xlane.xlu1 %161  ;;  %327 = vpow2.f32 %v69_v23  ;;  %v476_v27 = vsub.f32 %v31_v4, %v54_v25 }
  0xa2   :  { %v478_v28 = vsub.f32 %v37_v5, %v162_v26  ;;  %329 = vpow2.f32 %v177_v24 }
  0xa3   :  { %v71_v29 = vmul.f32 1.442695, %v476_v27 }
  0xa4   :  { %v179_v30 = vmul.f32 1.442695, %v478_v28  ;;  %v56_v31 = vpop.xlane.xlu0 %55 }
  0xa5   :  { %v164_v32 = vpop.xlane.xlu1 %163  ;;  %331 = vpow2.f32 %v71_v29  ;;  %v482_v33 = vsub.f32 %v32_v6, %v56_v31 }
  0xa6   :  { %v484_v34 = vsub.f32 %v38_v7, %v164_v32  ;;  %333 = vpow2.f32 %v179_v30 }
  0xa7   :  { %v73_v35 = vmul.f32 1.442695, %v482_v33 }
  0xa8   :  { %v181_v36 = vmul.f32 1.442695, %v484_v34  ;;  %v58_v37 = vpop.xlane.xlu0 %57 }
  0xa9   :  { %v166_v38 = vpop.xlane.xlu1 %165  ;;  %335 = vpow2.f32 %v73_v35  ;;  %v488_v39 = vsub.f32 %v33_v8, %v58_v37 }
  0xaa   :  { %v490_v40 = vsub.f32 %v39_v9, %v166_v38  ;;  %v324_v41 = vpop.eup %323  ;;  %337 = vpow2.f32 %v181_v36 }
  0xab   :  { %v75_v42 = vmul.f32 1.442695, %v488_v39  ;;  %79 = vadd.xlane.f32.xlu0 %v324_v41  ;;  %v494_v44 = vpop.eup %325 }
  0xac   :  { %v183_v43 = vmul.f32 1.442695, %v490_v40  ;;  %v60_v45 = vpop.xlane.xlu0 %59 }
  0xad   :  { %339 = vpow2.f32 %v75_v42  ;;  %v496_v46 = vsub.f32 %v34_v10, %v60_v45  ;;  %v168_v62 = vpop.xlane.xlu1 %167 }
  0xae   :  { %v328_v47 = vpop.eup %327  ;;  %341 = vpow2.f32 %v183_v43  ;;  %v528_v63 = vsub.f32 %v461_v11, %v168_v62  ;;  %v47_v11 = vlaneseq }
  0xaf   :  { %v77_v48 = vmul.f32 1.442695, %v496_v46  ;;  %187 = vadd.xlane.f32.xlu0 %v494_v44  ;;  %81 = vadd.xlane.f32.xlu1 %v328_v47  ;;  %v500_v49 = vpop.eup %329 }
  0xb0   :  { %v185_v0 = vmul.f32 1.442695, %v528_v63  ;;  %v537_v19 = vand.u32 127, %v47_v11 }
  0xb1   :  { %343 = vpow2.f32 %v77_v48 }
  0xb2   :  { %v332_v50 = vpop.eup %331  ;;  %345 = vpow2.f32 %v185_v0 }
  0xb3   :  { %189 = vadd.xlane.f32.xlu1 %v500_v49  ;;  %83 = vadd.xlane.f32.xlu0 %v332_v50  ;;  %v503_v51 = vpop.eup %333 }
  0xb6   :  { %v336_v52 = vpop.eup %335 }
  0xb7   :  { %191 = vadd.xlane.f32.xlu1 %v503_v51  ;;  %85 = vadd.xlane.f32.xlu0 %v336_v52  ;;  %v506_v53 = vpop.eup %337 }
  0xba   :  { %v340_v54 = vpop.eup %339 }
  0xbb   :  { %193 = vadd.xlane.f32.xlu1 %v506_v53  ;;  %87 = vadd.xlane.f32.xlu0 %v340_v54  ;;  %v509_v55 = vpop.eup %341 }
  0xbe   :  { %v344_v56 = vpop.eup %343 }
  0xbf   :  { %195 = vadd.xlane.f32.xlu1 %v509_v55  ;;  %89 = vadd.xlane.f32.xlu0 %v344_v56  ;;  %v531_v1 = vpop.eup %345 }
  0xd0   :  { %107 = vperm.xlu1 %322, %v42_v57  }
  0xd4   :  { %110 = vperm.xlu1 %322, %v43_v58  }
  0xd5   :  { %104 = vperm.xlu0 %321, %v41_v59  }
  0xd8   :  { %113 = vperm.xlu1 %322, %v44_v60  }
  0xdc   :  { %116 = vperm.xlu1 %322, %v45_v61  }
 0x100   :  { %197 = vadd.xlane.f32.xlu1 %v531_v1 }
 0x111   :  { %119 = vperm.xlu1 %322, %v46_v2  }
 0x134   :  { %v80_v3 = vpop.xlane.xlu0 %79 }
 0x135   :  { %347 = vlog2.f32 %v80_v3 }
 0x138   :  { %v82_v4 = vpop.xlane.xlu1 %81  ;;  %v188_v5 = vpop.xlane.xlu0 %187 }
 0x139   :  { %349 = vlog2.f32 %v188_v5 }
 0x13a   :  { %351 = vlog2.f32 %v82_v4 }
 0x13c   :  { %v190_v6 = vpop.xlane.xlu1 %189  ;;  %v84_v7 = vpop.xlane.xlu0 %83 }
 0x13d   :  { %353 = vlog2.f32 %v190_v6 }
 0x13e   :  { %355 = vrcp.f32 %v188_v5 }
 0x13f   :  { %357 = vrcp.f32 %v190_v6 }
 0x140   :  { %v192_v8 = vpop.xlane.xlu1 %191  ;;  %v86_v9 = vpop.xlane.xlu0 %85 }
 0x141   :  { %359 = vlog2.f32 %v192_v8 }
 0x142   :  { %361 = vlog2.f32 %v84_v7  ;;  %v348_v13 = vpop.eup %347 }
 0x143   :  { %363 = vrcp.f32 %v192_v8  ;;  %v539_v24 = vmul.f32 0.6931472, %v348_v13 }
 0x144   :  { %v194_v10 = vpop.xlane.xlu1 %193  ;;  %v88_v12 = vpop.xlane.xlu0 %87 }
 0x145   :  { %365 = vlog2.f32 %v194_v10  ;;  %v151_v38 = vsub.f32 %v464_v15, %v539_v24 }
 0x146   :  { %367 = vlog2.f32 %v86_v9  ;;  %v350_v14 = vpop.eup %349 }
 0x147   :  { %v224_v18 = vmul.f32 0.6931472, %v350_v14  ;;  %369 = vrcp.f32 %v194_v10  ;;  %v352_v20 = vpop.eup %351 }
 0x148   :  { %v196_v17 = vpop.xlane.xlu1 %195  ;;  %v541_v29 = vpop.xlane.xlu0 %89  ;;  %v545_v35 = vmul.f32 0.6931472, %v352_v20 }
 0x149   :  { %371 = vlog2.f32 %v196_v17  ;;  %v235_v31 = vsub.f32 %v466_v16, %v224_v18 }
 0x14a   :  { %v354_v23 = vpop.eup %353  ;;  %373 = vlog2.f32 %v88_v12  ;;  %v152_v56 = vsub.f32 %v470_v21, %v545_v35 }
 0x14b   :  { %v356_v25 = vpop.eup %355  ;;  %v226_v26 = vmul.f32 0.6931472, %v354_v23  ;;  %375 = vrcp.f32 %v196_v17  ;;  %v241_v16 = vsub.f32 %v235_v31, %v151_v38 }
 0x14c   :  { %v108_v30 = vpop.permute.xlu1 %107  ;;  %v358_v32 = vpop.eup %357  ;;  %v211_v41 = vmul.f32 %v356_v25, %v494_v44  ;;  %377 = vlog2.f32 %v541_v29 }
 0x14d   :  { %vm122_vm0 = vcmp.eq.s32.totalorder %v537_v19, %v108_v30  ;;  %v236_v47 = vsub.f32 %v472_v22, %v226_v26  ;;  %v212_v44 = vmul.f32 %v358_v32, %v500_v49 }
 0x14e   :  { %v128_v36 = vsel %vm122_vm0, %v470_v21, 0.0  ;;  %v360_v37 = vpop.eup %359  ;;  %v217_v22 = vadd.f32 1e-07, %v211_v41 }
 0x14f   :  { %135 = vadd.xlane.f32.xlu0 %v128_v36  ;;  %v362_v42 = vpop.eup %361  ;;  %v228_v48 = vmul.f32 0.6931472, %v360_v37  ;;  %v242_v61 = vsub.f32 %v236_v47, %v152_v56  ;;  %v218_v3 = vadd.f32 1e-07, %v212_v44 }
 0x150   :  { %v111_v43 = vpop.permute.xlu1 %110  ;;  %v105_v45 = vpop.permute.xlu0 %104  ;;  %v559_v58 = vmul.f32 0.6931472, %v362_v42  ;;  %v247_v0 = vmul.f32 %v241_v16, %v217_v22 }
 0x151   :  { %vm123_vm1 = vcmp.eq.s32.totalorder %v537_v19, %v111_v43  ;;  %vm121_vm2 = vcmp.eq.s32.totalorder %v537_v19, %v105_v45  ;;  %v364_v50 = vpop.eup %363  ;;  %v248_v9 = vmul.f32 %v242_v61, %v218_v3 }
 0x152   :  { %v129_v52 = vsel %vm123_vm1, %v476_v27, 0.0  ;;  %v127_v54 = vsel %vm121_vm2, %v464_v15, 0.0  ;;  %v366_v57 = vpop.eup %365  ;;  %v237_v15 = vsub.f32 %v478_v28, %v228_v48  ;;  %v153_v5 = vsub.f32 %v476_v27, %v559_v58 }
 0x153   :  { %137 = vadd.xlane.f32.xlu0 %v129_v52  ;;  %133 = vadd.xlane.f32.xlu1 %v127_v54  ;;  %v368_v59 = vpop.eup %367  ;;  %v230_v62 = vmul.f32 0.6931472, %v366_v57  ;;  %v213_v6 = vmul.f32 %v364_v50, %v503_v51 }
 0x154   :  { %v114_v60 = vpop.permute.xlu1 %113  ;;  %v370_v2 = vpop.eup %369  ;;  %v564_v4 = vmul.f32 0.6931472, %v368_v59  ;;  %v243_v28 = vsub.f32 %v237_v15, %v153_v5 }
 0x155   :  { %vm124_vm3 = vcmp.eq.s32.totalorder %v537_v19, %v114_v60  ;;  %v238_v11 = vsub.f32 %v484_v34, %v230_v62  ;;  %v219_v14 = vadd.f32 1e-07, %v213_v6  ;;  %v214_v51 = vmul.f32 %v370_v2, %v506_v53 }
 0x156   :  { %v130_v21 = vsel %vm124_vm3, %v482_v33, 0.0  ;;  %v372_v49 = vpop.eup %371  ;;  %v154_v27 = vsub.f32 %v482_v33, %v564_v4 }
 0x157   :  { %139 = vadd.xlane.f32.xlu0 %v130_v21  ;;  %253 = vadd.xlane.f32.xlu1 %v247_v0  ;;  %v374_v7 = vpop.eup %373  ;;  %v232_v10 = vmul.f32 0.6931472, %v372_v49  ;;  %v249_v18 = vmul.f32 %v243_v28, %v219_v14  ;;  %v220_v25 = vadd.f32 1e-07, %v214_v51 }
 0x158   :  { %v117_v8 = vpop.permute.xlu1 %116  ;;  %v572_v13 = vmul.f32 0.6931472, %v374_v7  ;;  %v376_v17 = vpop.eup %375  ;;  %v244_v20 = vsub.f32 %v238_v11, %v154_v27 }
 0x159   :  { %vm125_vm4 = vcmp.eq.s32.totalorder %v537_v19, %v117_v8  ;;  %v239_v23 = vsub.f32 %v490_v40, %v232_v10  ;;  %v215_v26 = vmul.f32 %v376_v17, %v509_v55 }
 0x15a   :  { %v131_v12 = vsel %vm125_vm4, %v488_v39, 0.0  ;;  %v155_v34 = vsub.f32 %v488_v39, %v572_v13  ;;  %v250_v30 = vmul.f32 %v244_v20, %v220_v25  ;;  %v378_v39 = vpop.eup %377 }
 0x15b   :  { %141 = vadd.xlane.f32.xlu0 %v131_v12  ;;  %255 = vadd.xlane.f32.xlu1 %v248_v9  ;;  %v221_v32 = vadd.f32 1e-07, %v215_v26  ;;  %v102_v55 = vmul.f32 0.6931472, %v378_v39 }
 0x15c   :  { %v245_v31 = vsub.f32 %v239_v23, %v155_v34 }
 0x15d   :  { %v156_v43 = vsub.f32 %v496_v46, %v102_v55 }
 0x15e   :  { %v251_v36 = vmul.f32 %v245_v31, %v221_v32 }
 0x15f   :  { %257 = vadd.xlane.f32.xlu1 %v249_v18 }
 0x163   :  { %259 = vadd.xlane.f32.xlu1 %v250_v30 }
 0x167   :  { %261 = vadd.xlane.f32.xlu1 %v251_v36 }
 0x189   :  { %v198_v33 = vpop.xlane.xlu1 %197 }
 0x18a   :  { %379 = vrcp.f32 %v198_v33 }
 0x18b   :  { %381 = vlog2.f32 %v198_v33 }
 0x18d   :  { %v120_v53 = vpop.permute.xlu1 %119 }
 0x18e   :  { %vm126_vm5 = vcmp.eq.s32.totalorder %v537_v19, %v120_v53 }
 0x18f   :  { %v132_v40 = vsel %vm126_vm5, %v496_v46, 0.0 }
 0x190   :  { %143 = vadd.xlane.f32.xlu0 %v132_v40 }
 0x197   :  { %v380_v37 = vpop.eup %379 }
 0x198   :  { %v382_v38 = vpop.eup %381  ;;  %v216_v42 = vmul.f32 %v380_v37, %v531_v1 }
 0x199   :  { %v234_v41 = vmul.f32 0.6931472, %v382_v38 }
 0x19a   :  { %v222_v45 = vadd.f32 1e-07, %v216_v42 }
 0x19b   :  { %v240_v29 = vsub.f32 %v528_v63, %v234_v41 }
 0x19d   :  { %v246_v47 = vsub.f32 %v240_v29, %v156_v43 }
 0x19f   :  { %v252_v48 = vmul.f32 %v246_v47, %v222_v45 }
 0x1a1   :  { %263 = vadd.xlane.f32.xlu1 %v252_v48 }
 0x1d8   :  { %v136_v52 = vpop.xlane.xlu0 %135 }
 0x1d9   :  { %v146_v59 = vsub.f32 %v545_v35, %v136_v52 }
 0x1dc   :  { %v134_v16 = vpop.xlane.xlu1 %133  ;;  %v138_v56 = vpop.xlane.xlu0 %137 }
 0x1dd   :  { %v145_v63 = vsub.f32 %v539_v24, %v134_v16  ;;  %v147_v61 = vsub.f32 %v559_v58, %v138_v56 }
 0x1e0   :  { %v254_v19 = vpop.xlane.xlu1 %253  ;;  %v140_v57 = vpop.xlane.xlu0 %139 }
 0x1e1   :  { %v265_v1 = vmul.f32 10.0, %v254_v19  ;;  %v148_v21 = vsub.f32 %v564_v4, %v140_v57 }
 0x1e3   :  { %v271_v2 = vadd.f32 %v265_v1, %v145_v63 }
 0x1e4   :  { %v256_v50 = vpop.xlane.xlu1 %255  ;;  %v142_v15 = vpop.xlane.xlu0 %141 }
 0x1e5   :  { %v266_v22 = vmul.f32 10.0, %v256_v50  ;;  %v149_v35 = vsub.f32 %v572_v13, %v142_v15  ;;  %v278_v7 = vsel %vm277_vm6, %v271_v2, 0.0 }
 0x1e7   :  { %v272_v62 = vadd.f32 %v266_v22, %v146_v59 }
 0x1e8   :  { %v258_v54 = vpop.xlane.xlu1 %257 }
 0x1e9   :  { %v267_v60 = vmul.f32 10.0, %v258_v54  ;;  %v279_v5 = vsel %vm277_vm6, %v272_v62, 0.0 }
 0x1ea   :  { %v280_v58 = vadd.f32 %v279_v5, %v278_v7 }
 0x1eb   :  { %v273_v3 = vadd.f32 %v267_v60, %v147_v61 }
 0x1ec   :  { %v260_v44 = vpop.xlane.xlu1 %259 }
 0x1ed   :  { %v268_v0 = vmul.f32 10.0, %v260_v44  ;;  %v281_v24 = vsel %vm277_vm6, %v273_v3, 0.0 }
 0x1ee   :  { %v282_v28 = vadd.f32 %v281_v24, %v280_v58 }
 0x1ef   :  { %v274_v6 = vadd.f32 %v268_v0, %v148_v21 }
 0x1f0   :  { %v262_v46 = vpop.xlane.xlu1 %261 }
 0x1f1   :  { %v269_v49 = vmul.f32 10.0, %v262_v46  ;;  %v283_v10 = vsel %vm277_vm6, %v274_v6, 0.0 }
 0x1f2   :  { %v284_v27 = vadd.f32 %v283_v10, %v282_v28 }
 0x1f3   :  { %v275_v8 = vadd.f32 %v269_v49, %v149_v35 }
 0x1f5   :  { %v285_v14 = vsel %vm277_vm6, %v275_v8, 0.0 }
 0x1f6   :  { %v286_v17 = vadd.f32 %v285_v14, %v284_v27 }
 0x219   :  { %v144_v9 = vpop.xlane.xlu0 %143 }
 0x21a   :  { %v150_v4 = vsub.f32 %v102_v55, %v144_v9 }
 0x22a   :  { %v264_v11 = vpop.xlane.xlu1 %263 }
 0x22b   :  { %v270_v12 = vmul.f32 10.0, %v264_v11 }
 0x22d   :  { %v276_v51 = vadd.f32 %v270_v12, %v150_v4 }
 0x22f   :  { %v287_v13 = vsel %vm277_vm6, %v276_v51, 0.0 }
 0x230   :  { %v288_v18 = vadd.f32 %v287_v13, %v286_v17 }
 0x232   :  { %289 = vadd.xlane.f32.xlu0 %v288_v18 }
 0x2bb   :  { %v290_v20 = vpop.xlane.xlu0 %289 }
 0x2bc   :  { %v291_v23 = vrot.slane %v290_v20, 4 }
 0x2be   :  { %v292_v25 = vadd.f32 %v291_v23, %v290_v20 }
 0x2c0   :  { %v293_v34 = vrot.slane %v292_v25, 2 }
 0x2c2   :  { %v294_v26 = vadd.f32 %v293_v34, %v292_v25 }
 0x2c4   :  { %v295_v30 = vrot.slane %v294_v26, 1 }
 0x2c6   :  { %v296_v31 = vadd.f32 %v295_v30, %v294_v26 }
 0x2c8   :  { %314 = vpush %v296_v31 }
 0x2f9   :  { %s315_s0 = spop %314 }
 0x2fa   :  { %299 = sst [smem:[#allocation5]] %s315_s0 }
 0x2fb   :  { %307 = dma.smem_to_hbm %s419_s14, 16, %s604_s3, [#allocation4]  }
 0x2fc   :  { %413 = dma.done.wait [#allocation4], 16  }
 0x2fd   :  { %414 = vsyncadd [#allocation4], 4294967280 }
 0x2fe   :  { %311 = sfence }
 0x2ff   :  { %312 = vsyncpa [#allocation3], 1 }
 0x300   :  { %313 = vsyncpa [#allocation4], 1 }

</bundles_post_ra>
